<compile_context>
chip_gen: v6e
topology: v6e:2x2x1
jax: 0.10.0
libtpu: 0.0.40
codegen_flags: <defaults>
</compile_context>

<pallas_src>
import functools

import jax
import jax.numpy as jnp
from jax import lax
from jax.experimental import pallas as pl
from jax.experimental.pallas import tpu as pltpu


def _cnn1d_kernel(patches_ref, w1_ref, w2_ref, b2_ref, wfc_ref, bfc_ref, out_ref,
                  *, B, L, C, K):
    pad = K // 2
    BL = B * L

    # ---- conv1 (+ bias folded into the padded contraction row): one MXU matmul ----
    h1 = jnp.dot(patches_ref[...], w1_ref[...],
                 preferred_element_type=jnp.float32)                  # [B*L, C] f32
    h1 = jnp.maximum(h1, 0.0)                                         # ReLU in f32
    h1b = h1.astype(jnp.bfloat16)                                     # cast once, [32,128]

    # ---- conv2: K per-tap matmuls on the un-shifted slab. Off-center taps are
    # realigned with a sublane roll (XLU) and masked at sequence boundaries (VPU),
    # accumulating into a single f32 value. No halo scratch, no lane concat. ----
    row_l = lax.broadcasted_iota(jnp.int32, (BL, C), 0) % L           # l index per row

    acc = jnp.dot(h1b, w2_ref[pad], preferred_element_type=jnp.float32)   # center tap
    for j in range(K):
        if j == pad:
            continue
        d = j - pad
        yj = jnp.dot(h1b, w2_ref[j], preferred_element_type=jnp.float32)  # [B*L, C]
        yj = pltpu.roll(yj, shift=(-d) % BL, axis=0)                  # out[r] = yj[r + d]
        valid = (row_l + d >= 0) & (row_l + d < L)                    # zero-pad halo mask
        acc = acc + jnp.where(valid, yj, 0.0)
    h2 = jnp.maximum(acc + b2_ref[...], 0.0)                          # [B*L, C] f32

    # ---- flatten + fc: elementwise multiply + reduce, all in f32 (no relayout,
    # no tiny M=2/N=1 matmul). wfc is [L, C] and broadcasts over the batch dim. ----
    prod = h2.reshape(B, L, C) * wfc_ref[...]                         # [B, L, C] f32
    s = jnp.sum(prod, axis=2, keepdims=True)                          # [B, L, 1]
    out_ref[...] = jnp.sum(s, axis=1) + bfc_ref[0]                    # [B, 1] + SMEM scalar


def cnn1d_forward(x, w1, b1, w2, b2, wfc, bfc):
    """x: [B, L]; w1: [K, C]; b1: [C]; w2: [K, Cin, Cout]; b2: [C];
    wfc: [L, C] with wfc[l, c] == W_fc[0, c*L + l]; bfc: [1]."""
    B, L = x.shape
    K, C = w1.shape
    pad = K // 2
    assert K % 2 == 1, "even kernel_size changes the PyTorch output length (L+1)"

    # Wrapper-side layout plumbing (XLA): im2col patch matrix for conv1 with an extra
    # all-ones column so the conv1 bias rides along in the (sublane-padded) contraction.
    Kp = max(8, pl.cdiv(K + 1, 8) * 8)
    xp = jnp.pad(x, ((0, 0), (pad, pad)))                                   # [B, L+2*pad]
    patches = jnp.stack([xp[:, j:j + L] for j in range(K)], axis=-1)        # [B, L, K]
    patches = patches.reshape(B * L, K)
    patches = jnp.concatenate([patches, jnp.ones((B * L, 1), x.dtype)], axis=-1)
    patches = jnp.pad(patches, ((0, 0), (0, Kp - (K + 1)))).astype(jnp.bfloat16)  # [B*L, Kp]

    w1p = jnp.concatenate([w1, b1.reshape(1, C)], axis=0)                   # bias row
    w1p = jnp.pad(w1p, ((0, Kp - (K + 1)), (0, 0))).astype(jnp.bfloat16)    # [Kp, C]
    w2b = w2.astype(jnp.bfloat16)                                           # [K, C, C]

    kernel = functools.partial(_cnn1d_kernel, B=B, L=L, C=C, K=K)
    vmem = pl.BlockSpec(memory_space=pltpu.MemorySpace.VMEM)
    smem = pl.BlockSpec(memory_space=pltpu.MemorySpace.SMEM)

    # NOTE: gridless single block is fastest at B=2 / L=16 / C=128 (grid-step overhead
    # ~0.35us/step exceeds total compute, so do NOT split across TCs at this size).
    # If B/L scale up: add grid=(B // bb,) with dimension_semantics=("parallel",), give
    # the weights index_maps returning a constant block so they stay VMEM-resident,
    # keep the per-block output lane width a multiple of 128, and re-derive bb against
    # v7x's 32 MiB default scoped VMEM (64 MiB total) -- not v6e's 128 MiB.
    out = pl.pallas_call(
        kernel,
        out_shape=jax.ShapeDtypeStruct((B, 1), jnp.float32),
        in_specs=[vmem, vmem, vmem, vmem, vmem, smem],
        out_specs=vmem,
    )(patches, w1p, w2b, b2.reshape(1, C), wfc, bfc)
    return out[:, 0]


def cnn1d_reference(x, w1, b1, w2, b2, wfc, bfc):
    """Pure-JAX f32 reference matching the PyTorch forward semantics."""
    B, L = x.shape
    K, C = w1.shape
    pad = K // 2
    xp = jnp.pad(x, ((0, 0), (pad, pad)))
    h1 = jnp.zeros((B, L, C), jnp.float32)
    for j in range(K):
        h1 = h1 + xp[:, j:j + L, None] * w1[j][None, None, :]
    h1 = jax.nn.relu(h1 + b1[None, None, :])
    h1p = jnp.pad(h1, ((0, 0), (pad, pad), (0, 0)))
    h2 = jnp.zeros((B, L, C), jnp.float32)
    for j in range(K):
        h2 = h2 + jnp.einsum('blc,cd->bld', h1p[:, j:j + L, :], w2[j])
    h2 = jax.nn.relu(h2 + b2[None, None, :])
    return jnp.sum(h2 * wfc[None, :, :], axis=(1, 2)) + bfc[0]


if __name__ == "__main__":
    # Module defaults: hidden_channels=128, kernel_size=3; small batch / input_size.
    B, L, C, K = 2, 16, 128, 3

    key = jax.random.PRNGKey(0)
    kx, k1, kb1, k2, kb2, kf, kbf = jax.random.split(key, 7)

    x = jax.random.normal(kx, (B, L), jnp.float32)
    # conv1 weight: PyTorch [C, 1, K] -> stored as [K, C]
    w1 = jax.random.normal(k1, (K, C), jnp.float32) * 0.1
    b1 = jax.random.normal(kb1, (C,), jnp.float32) * 0.1
    # conv2 weight: PyTorch [Cout, Cin, K] -> stored as [K, Cin, Cout]
    w2 = jax.random.normal(k2, (K, C, C), jnp.float32) * 0.1
    b2 = jax.random.normal(kb2, (C,), jnp.float32) * 0.1
    # fc weight: PyTorch [1, C*L] with flatten index c*L + l -> stored as [L, C]
    wfc = jax.random.normal(kf, (L, C), jnp.float32) * 0.1
    bfc = jax.random.normal(kbf, (1,), jnp.float32) * 0.1

    y = cnn1d_forward(x, w1, b1, w2, b2, wfc, bfc)
    jax.block_until_ready(y)

    y_ref = cnn1d_reference(x, w1, b1, w2, b2, wfc, bfc)
    assert y.shape == (B,)
    # bf16 matmul operands (f32 accumulation) -> looser tolerance vs the f32 reference.
    assert jnp.allclose(y, y_ref, atol=5e-2, rtol=5e-2), (y, y_ref)

    print("KERNEL_OK")
</pallas_src>

<mosaic_0001>
module attributes {stable_mosaic.version = 11 : i64} {
  func.func @_cnn1d_kernel(%arg0: memref<32x8xbf16, #tpu.memory_space<vmem>>, %arg1: memref<8x128xbf16, #tpu.memory_space<vmem>>, %arg2: memref<3x128x128xbf16, #tpu.memory_space<vmem>>, %arg3: memref<1x128xf32, #tpu.memory_space<vmem>>, %arg4: memref<16x128xf32, #tpu.memory_space<vmem>>, %arg5: memref<1xf32, #tpu.memory_space<smem>>, %arg6: memref<2x1xf32, #tpu.memory_space<vmem>>) attributes {dimension_semantics = [], scalar_prefetch = 0 : i64, scratch_operands = 0 : i64, tpu.core_type = #tpu.core_type<tc>} {
    %c0 = arith.constant 0 : index
    %c0_0 = arith.constant 0 : index
    %0 = vector.load %arg0[%c0, %c0_0] : memref<32x8xbf16, #tpu.memory_space<vmem>>, vector<32x8xbf16>
    %c0_1 = arith.constant 0 : index
    %c0_2 = arith.constant 0 : index
    %1 = vector.load %arg1[%c0_1, %c0_2] : memref<8x128xbf16, #tpu.memory_space<vmem>>, vector<8x128xbf16>
    %cst = arith.constant dense<0.000000e+00> : vector<32x128xf32>
    %2 = tpu.matmul %0, %1, %cst {dimension_numbers = #tpu.dot_dimension_numbers<[1], [0], [0], [1], [0, 0, 1, 1], [], []>} : vector<32x8xbf16>, vector<8x128xbf16>, vector<32x128xf32> -> vector<32x128xf32>
    %cst_3 = arith.constant 0.000000e+00 : f32
    %3 = vector.broadcast %cst_3 : f32 to vector<32x128xf32>
    %4 = arith.maximumf %2, %3 : vector<32x128xf32>
    %5 = arith.truncf %4 : vector<32x128xf32> to vector<32x128xbf16>
    %6 = tpu.iota {dimensions = array<i32: 0>} : vector<32x128xi32>
    %c16_i32 = arith.constant 16 : i32
    %c0_i32 = arith.constant 0 : i32
    %7 = arith.cmpi eq, %c16_i32, %c0_i32 : i32
    %c1_i32 = arith.constant 1 : i32
    %8 = arith.select %7, %c1_i32, %c16_i32 : i32
    %9 = vector.broadcast %8 : i32 to vector<32x128xi32>
    %10 = arith.remsi %6, %9 : vector<32x128xi32>
    %c0_i32_4 = arith.constant 0 : i32
    %11 = vector.broadcast %c0_i32_4 : i32 to vector<32x128xi32>
    %12 = arith.cmpi ne, %10, %11 : vector<32x128xi32>
    %c0_i32_5 = arith.constant 0 : i32
    %13 = vector.broadcast %c0_i32_5 : i32 to vector<32x128xi32>
    %14 = arith.cmpi slt, %10, %13 : vector<32x128xi32>
    %c0_i32_6 = arith.constant 0 : i32
    %15 = arith.cmpi slt, %8, %c0_i32_6 : i32
    %16 = vector.broadcast %15 : i1 to vector<32x128xi1>
    %17 = vector.broadcast %16 : vector<32x128xi1> to vector<32x128xi1>
    %18 = arith.xori %14, %17 : vector<32x128xi1>
    %19 = arith.andi %18, %12 : vector<32x128xi1>
    %20 = vector.broadcast %8 : i32 to vector<32x128xi32>
    %21 = arith.addi %10, %20 : vector<32x128xi32>
    %22 = arith.select %19, %21, %10 : vector<32x128xi1>, vector<32x128xi32>
    %c1 = arith.constant 1 : index
    %c0_7 = arith.constant 0 : index
    %c0_8 = arith.constant 0 : index
    %23 = vector.load %arg2[%c1, %c0_7, %c0_8] : memref<3x128x128xbf16, #tpu.memory_space<vmem>>, vector<1x128x128xbf16>
    %24 = vector.shape_cast %23 : vector<1x128x128xbf16> to vector<128x128xbf16>
    %cst_9 = arith.constant dense<0.000000e+00> : vector<32x128xf32>
    %25 = tpu.matmul %5, %24, %cst_9 {dimension_numbers = #tpu.dot_dimension_numbers<[1], [0], [0], [1], [0, 0, 1, 1], [], []>} : vector<32x128xbf16>, vector<128x128xbf16>, vector<32x128xf32> -> vector<32x128xf32>
    %c0_10 = arith.constant 0 : index
    %c0_11 = arith.constant 0 : index
    %c0_12 = arith.constant 0 : index
    %26 = vector.load %arg2[%c0_10, %c0_11, %c0_12] : memref<3x128x128xbf16, #tpu.memory_space<vmem>>, vector<1x128x128xbf16>
    %27 = vector.shape_cast %26 : vector<1x128x128xbf16> to vector<128x128xbf16>
    %cst_13 = arith.constant dense<0.000000e+00> : vector<32x128xf32>
    %28 = tpu.matmul %5, %27, %cst_13 {dimension_numbers = #tpu.dot_dimension_numbers<[1], [0], [0], [1], [0, 0, 1, 1], [], []>} : vector<32x128xbf16>, vector<128x128xbf16>, vector<32x128xf32> -> vector<32x128xf32>
    %c1_i32_14 = arith.constant 1 : i32
    %29 = tpu.dynamic_rotate %28 by %c1_i32_14 dim 0 : vector<32x128xf32>, i32 -> vector<32x128xf32>
    %c-1_i32 = arith.constant -1 : i32
    %30 = vector.broadcast %c-1_i32 : i32 to vector<32x128xi32>
    %31 = arith.addi %22, %30 : vector<32x128xi32>
    %c0_i32_15 = arith.constant 0 : i32
    %32 = vector.broadcast %c0_i32_15 : i32 to vector<32x128xi32>
    %33 = arith.cmpi sge, %31, %32 : vector<32x128xi32>
    %c-1_i32_16 = arith.constant -1 : i32
    %34 = vector.broadcast %c-1_i32_16 : i32 to vector<32x128xi32>
    %35 = arith.addi %22, %34 : vector<32x128xi32>
    %c16_i32_17 = arith.constant 16 : i32
    %36 = vector.broadcast %c16_i32_17 : i32 to vector<32x128xi32>
    %37 = arith.cmpi slt, %35, %36 : vector<32x128xi32>
    %38 = arith.andi %33, %37 : vector<32x128xi1>
    %cst_18 = arith.constant 0.000000e+00 : f32
    %39 = vector.broadcast %cst_18 : f32 to vector<32x128xf32>
    %40 = arith.select %38, %29, %39 : vector<32x128xi1>, vector<32x128xf32>
    %41 = arith.addf %25, %40 : vector<32x128xf32>
    %c2 = arith.constant 2 : index
    %c0_19 = arith.constant 0 : index
    %c0_20 = arith.constant 0 : index
    %42 = vector.load %arg2[%c2, %c0_19, %c0_20] : memref<3x128x128xbf16, #tpu.memory_space<vmem>>, vector<1x128x128xbf16>
    %43 = vector.shape_cast %42 : vector<1x128x128xbf16> to vector<128x128xbf16>
    %cst_21 = arith.constant dense<0.000000e+00> : vector<32x128xf32>
    %44 = tpu.matmul %5, %43, %cst_21 {dimension_numbers = #tpu.dot_dimension_numbers<[1], [0], [0], [1], [0, 0, 1, 1], [], []>} : vector<32x128xbf16>, vector<128x128xbf16>, vector<32x128xf32> -> vector<32x128xf32>
    %c31_i32 = arith.constant 31 : i32
    %45 = tpu.dynamic_rotate %44 by %c31_i32 dim 0 : vector<32x128xf32>, i32 -> vector<32x128xf32>
    %c1_i32_22 = arith.constant 1 : i32
    %46 = vector.broadcast %c1_i32_22 : i32 to vector<32x128xi32>
    %47 = arith.addi %22, %46 : vector<32x128xi32>
    %c0_i32_23 = arith.constant 0 : i32
    %48 = vector.broadcast %c0_i32_23 : i32 to vector<32x128xi32>
    %49 = arith.cmpi sge, %47, %48 : vector<32x128xi32>
    %c1_i32_24 = arith.constant 1 : i32
    %50 = vector.broadcast %c1_i32_24 : i32 to vector<32x128xi32>
    %51 = arith.addi %22, %50 : vector<32x128xi32>
    %c16_i32_25 = arith.constant 16 : i32
    %52 = vector.broadcast %c16_i32_25 : i32 to vector<32x128xi32>
    %53 = arith.cmpi slt, %51, %52 : vector<32x128xi32>
    %54 = arith.andi %49, %53 : vector<32x128xi1>
    %cst_26 = arith.constant 0.000000e+00 : f32
    %55 = vector.broadcast %cst_26 : f32 to vector<32x128xf32>
    %56 = arith.select %54, %45, %55 : vector<32x128xi1>, vector<32x128xf32>
    %57 = arith.addf %41, %56 : vector<32x128xf32>
    %c0_27 = arith.constant 0 : index
    %c0_28 = arith.constant 0 : index
    %58 = vector.load %arg3[%c0_27, %c0_28] : memref<1x128xf32, #tpu.memory_space<vmem>>, vector<1x128xf32>
    %59 = vector.broadcast %58 : vector<1x128xf32> to vector<32x128xf32>
    %60 = arith.addf %57, %59 : vector<32x128xf32>
    %cst_29 = arith.constant 0.000000e+00 : f32
    %61 = vector.broadcast %cst_29 : f32 to vector<32x128xf32>
    %62 = arith.maximumf %60, %61 : vector<32x128xf32>
    %63 = vector.shape_cast %62 : vector<32x128xf32> to vector<2x16x128xf32>
    %c0_30 = arith.constant 0 : index
    %c0_31 = arith.constant 0 : index
    %64 = vector.load %arg4[%c0_30, %c0_31] : memref<16x128xf32, #tpu.memory_space<vmem>>, vector<16x128xf32>
    %65 = vector.shape_cast %64 : vector<16x128xf32> to vector<1x16x128xf32>
    %66 = vector.broadcast %65 : vector<1x16x128xf32> to vector<2x16x128xf32>
    %67 = arith.mulf %63, %66 : vector<2x16x128xf32>
    %cst_32 = arith.constant dense<0.000000e+00> : vector<2x16xf32>
    %68 = vector.multi_reduction <add>, %67, %cst_32 [2] : vector<2x16x128xf32> to vector<2x16xf32>
    %69 = vector.shape_cast %68 : vector<2x16xf32> to vector<2x16x1xf32>
    %cst_33 = arith.constant dense<0.000000e+00> : vector<2x1xf32>
    %70 = vector.multi_reduction <add>, %69, %cst_33 [1] : vector<2x16x1xf32> to vector<2x1xf32>
    %c0_34 = arith.constant 0 : index
    %71 = memref.load %arg5[%c0_34] : memref<1xf32, #tpu.memory_space<smem>>
    %72 = vector.broadcast %71 : f32 to vector<2x1xf32>
    %73 = arith.addf %70, %72 : vector<2x1xf32>
    %c0_35 = arith.constant 0 : index
    %c0_36 = arith.constant 0 : index
    %74 = vector.load %arg6[%c0_35, %c0_36] : memref<2x1xf32, #tpu.memory_space<vmem>>, vector<2x1xf32>
    tpu.vector_store %arg6[%c0_35, %c0_36], %73 {strides = array<i32>} : memref<2x1xf32, #tpu.memory_space<vmem>>, vector<2x1xf32>,
    return
  }
}

</mosaic_0001>

<bundles_post_ra>
// kernel: tpu_custom_call.1
= control target key start
LH: loop header
LB: loop body
LE: loop exit
PB: predicated region body
PF: predicated region fallthrough
CT: control target
= control target key end

     0   :  { %12 = vsyncpa [#allocation4], 0  ;;  %s815_s21 = smov [#allocation3]   ;;  %s888_s0 = inlined_call_operand.vmem [shape: bf16[32,8], index: 0, kind: input, shape index: {}]   ;;  %s889_s1 = inlined_call_operand.vmem [shape: bf16[8,128], index: 1, kind: input, shape index: {}]   ;;  %s890_s2 = inlined_call_operand.hbm [shape: bf16[3,128,128], index: 2, kind: input, shape index: {}]   ;;  %s891_s3 = inlined_call_operand.vmem [shape: f32[1,128], index: 3, kind: input, shape index: {}]   ;;  %s892_s4 = inlined_call_operand.vmem [shape: f32[16,128], index: 4, kind: input, shape index: {}]   ;;  %s893_s5 = inlined_call_operand.<no memory space> [shape: f32[1], index: 5, kind: input, shape index: {}]   ;;  %s894_s6 = inlined_call_operand.vmem [shape: f32[2,1], index: 6, kind: output, shape index: {}]  }
   0x1   :  { %s22_s22 = sshll.u32 %s815_s21, 4  ;;  %s23_s22 = int_to_ptr.vmem [resolvable:$true] %s22_s22 }
   0x2   :  { %s801_s23 = scalar_lea.vmem %s23_s22, 3072  ;;  %p806_p1 = scmp.lt.s32.totalorder %s23_s22, %s23_s22 }
   0x3   :  { %p802_p0 = scmp.ne.s32.totalorder %s23_s22, %s801_s23  ;;  %p807_p2 = scmp.lt.s32.totalorder %s801_s23, %s801_s23 }
   0x5   :  { %p808_p3 = por %p807_p2, %p806_p1 }
   0x7   :  { %p809_p4 = pnand %p808_p3, %p802_p0 }
   0x9   :  { %812 = shalt.err (!%p809_p4)
}
   0xa   :  { %s816_s24 = smov 64   ;;  %s817_s25 = smov 4  }
   0xb   :  { %28 = dma.hbm_to_vmem [thread:$0]  %s890_s2, 3072, %s23_s22, [#allocation4], %s816_s24, %s816_s24, %s817_s25  }
   0xc   :  { %813 = dma.done.wait [#allocation4], 3072  }
   0xd   :  { %814 = vsyncadd [#allocation4], 4294964224  ;;  %vm61_vm0 = vcmask 1043456   ;;  %vm54_vm1 = vcmask 64512   ;;  %v43_v0 = vld [vmem:[%s889_s1] sm:$0xf]  ;;  %v120_v38 = vlaneseq }
   0xe   :  { %763 = vmatprep.subr.msk.bf16.mxu0 %vm61_vm0, %v43_v0  ;;  %v63_v1 = vsel %vm61_vm0, %v43_v0, 0  ;;  %v767_v2 = vld [vmem:[%s888_s0] sm:$0xff]   ;;  %v768_v3 = vld [vmem:[%s888_s0 + $0x8] sm:$0xff]   ;;  %v769_v4 = vld [vmem:[#allocation3 + $0x38] sm:$0xff]   ;;  %vm625_vm8 = vcmask 1041409   ;;  %vm628_vm9 = vcmask 1024  }
   0xf   :  { %698 = vmatpush3.bf16.msra.mxu0 %v63_v1  ;;  %699 = vmatprep.mubr.msk.bf16.mxu0 %vm54_vm1, %v767_v2  ;;  %v770_v5 = vld [vmem:[#allocation3 + $0x78] sm:$0xff]   ;;  %v771_v6 = vld [vmem:[#allocation3 + $0x30] sm:$0xff]   ;;  %v773_v8 = vld [vmem:[#allocation3 + $0x28] sm:$0xff]   ;;  %v121_v40 = vshrl.u32 %v120_v38, 7 }
  0x10   :  { %703 = vmatprep.subr.bf16.mxu1 %v769_v4  ;;  %723 = vmatprep.subr.bf16.mxu0 %v770_v5  ;;  %v772_v7 = vld [vmem:[#allocation3 + $0x70] sm:$0xff]   ;;  %v774_v9 = vld [vmem:[#allocation3 + $0x68] sm:$0xff]   ;;  %v775_v10 = vld [vmem:[#allocation3 + $0x20] sm:$0xff]  }
  0x11   :  { %704 = vmatpush3.bf16.msra.mxu1 %v769_v4  ;;  %v776_v11 = vld [vmem:[#allocation3 + $0x60] sm:$0xff]   ;;  %v777_v12 = vld [vmem:[#allocation3 + $0x18] sm:$0xff]   ;;  %v779_v14 = vld [vmem:[#allocation3 + $0x10] sm:$0xff]   ;;  %v123_v42 = vadd.s32 16, %v121_v40  ;;  %v124_v45 = vadd.s32 24, %v121_v40  ;;  %v129_v47 = vand.u32 15, %v121_v40 }
  0x12   :  { %700 = vmatmul.mubr.msk.bf16.vlgmr.msra.gmra.mxu0 %vm54_vm1, %v768_v3  ;;  %705 = vmatprep.subr.bf16.mxu1 %v771_v6  ;;  %v778_v13 = vld [vmem:[#allocation3 + $0x58] sm:$0xff]   ;;  %v780_v15 = vld [vmem:[#allocation3 + $0x50] sm:$0xff]   ;;  %v781_v16 = vld [vmem:[#allocation3 + $0x8] sm:$0xff]   ;;  %v122_v48 = vadd.s32 8, %v121_v40  ;;  %vm307_vm2 = vcmp.lt.s32.totalorder %v121_v40, 1  ;;  %vm547_vm5 = vcmp.lt.s32.totalorder %v121_v40, 7 }
  0x13   :  { %724 = vmatpush3.bf16.msra.mxu0 %v770_v5  ;;  %v782_v17 = vld [vmem:[#allocation3 + $0x48] sm:$0xff]   ;;  %v783_v18 = vld [vmem:[#allocation3] sm:$0xff]   ;;  %v785_v20 = vld [vmem:[#allocation3 + $0xb8] sm:$0xff]   ;;  %v143_v44 = vand.u32 15, %v123_v42  ;;  %v150_v52 = vand.u32 15, %v124_v45  ;;  %v312_v55 = vadd.s32 4294967295, %v129_v47 }
  0x14   :  { %725 = vmatprep.subr.bf16.mxu0 %v772_v7  ;;  %v784_v19 = vld [vmem:[#allocation3 + $0x40] sm:$0xff]   ;;  %v786_v31 = vld [vmem:[#allocation3 + $0xb0] sm:$0xff]   ;;  %v787_v32 = vld [vmem:[#allocation3 + $0xa8] sm:$0xff]   ;;  %v136_v56 = vand.u32 15, %v122_v48 }
  0x15   :  { %706 = vmatpush3.bf16.msra.mxu1 %v771_v6  ;;  %v788_v33 = vld [vmem:[#allocation3 + $0xa0] sm:$0xff]   ;;  %v789_v34 = vld [vmem:[#allocation3 + $0x98] sm:$0xff]   ;;  %v790_v35 = vld [vmem:[#allocation3 + $0x90] sm:$0xff]   ;;  %v314_v51 = vadd.s32 4294967295, %v143_v44  ;;  %v555_v61 = vadd.s32 1, %v150_v52  ;;  %vm316_vm4 = vcmp.ge.s32.totalorder %v312_v55, 0 }
  0x16   :  { %707 = vmatprep.subr.bf16.mxu1 %v773_v8  ;;  %v791_v36 = vld [vmem:[#allocation3 + $0x88] sm:$0xff]   ;;  %v792_v37 = vld [vmem:[#allocation3 + $0x80] sm:$0xff]   ;;  %v553_v0 = vadd.s32 1, %v136_v56 }
  0x17   :  { %726 = vmatpush3.bf16.msra.mxu0 %v772_v7  ;;  %vm318_vm3 = vcmp.ge.s32.totalorder %v314_v51, 0  ;;  %vm563_vm6 = vcmp.lt.s32.totalorder %v555_v61, 16 }
  0x18   :  { %727 = vmatprep.subr.bf16.mxu0 %v774_v9  ;;  %vm561_vm7 = vcmp.lt.s32.totalorder %v553_v0, 16 }
  0x19   :  { %708 = vmatpush3.bf16.msra.mxu1 %v773_v8 }
  0x1a   :  { %709 = vmatprep.subr.bf16.mxu1 %v775_v10 }
  0x1b   :  { %728 = vmatpush3.bf16.msra.mxu0 %v774_v9 }
  0x1c   :  { %729 = vmatprep.subr.bf16.mxu0 %v776_v11 }
  0x1d   :  { %710 = vmatpush3.bf16.msra.mxu1 %v775_v10 }
  0x1e   :  { %711 = vmatprep.subr.bf16.mxu1 %v777_v12 }
  0x1f   :  { %730 = vmatpush3.bf16.msra.mxu0 %v776_v11 }
  0x20   :  { %731 = vmatprep.subr.bf16.mxu0 %v778_v13 }
  0x21   :  { %712 = vmatpush3.bf16.msra.mxu1 %v777_v12 }
  0x22   :  { %713 = vmatprep.subr.bf16.mxu1 %v779_v14 }
  0x23   :  { %732 = vmatpush3.bf16.msra.mxu0 %v778_v13 }
  0x24   :  { %733 = vmatprep.subr.bf16.mxu0 %v780_v15 }
  0x25   :  { %714 = vmatpush3.bf16.msra.mxu1 %v779_v14 }
  0x26   :  { %715 = vmatprep.subr.bf16.mxu1 %v781_v16 }
  0x27   :  { %734 = vmatpush3.bf16.msra.mxu0 %v780_v15 }
  0x28   :  { %735 = vmatprep.subr.bf16.mxu0 %v782_v17 }
  0x29   :  { %716 = vmatpush3.bf16.msra.mxu1 %v781_v16  ;;  %v663_v16 = vld [vmem:[%s891_s3] ss:$0 sm:$0xff] }
  0x2a   :  { %717 = vmatprep.subr.bf16.mxu1 %v783_v18 }
  0x2b   :  { %736 = vmatpush3.bf16.msra.mxu0 %v782_v17 }
  0x2c   :  { %737 = vmatprep.subr.bf16.mxu0 %v784_v19 }
  0x2d   :  { %718 = vmatpush3.bf16.msra.mxu1 %v783_v18 }
  0x2e   :  { %743 = vmatprep.subr.bf16.mxu1 %v785_v20 }
  0x2f   :  { %738 = vmatpush3.bf16.msra.mxu0 %v784_v19 }
  0xd2   :  { %v701_v21 = vpop.f32.mrf.mxu0 }
  0xd3   :  { %v116_v28 = vmax.f32 %v701_v21, 0.0 }
  0xd4   :  { %v99_v22 = vpop.f32.mrf.mxu0 }
  0xd5   :  { %v114_v26 = vmax.f32 %v99_v22, 0.0 }
  0xd6   :  { %v702_v23 = vpop.f32.mrf.mxu0 }
  0xd7   :  { %v117_v24 = vmax.f32 %v702_v23, 0.0 }
  0xd8   :  { %v102_v25 = vpop.f32.mrf.mxu0 }
  0xd9   :  { %v115_v27 = vmax.f32 %v102_v25, 0.0  ;;  %v119_v30 = vpack.c.bf16 %v117_v24, %v116_v28  ;;  %v591_v28 = vld [vmem:[%s892_s4] sm:$0xff] }
  0xdb   :  { %v118_v29 = vpack.c.bf16 %v115_v27, %v114_v26 }
  0xdd   :  { %719 = vmatprep.mubr.bf16.mxu1 %v118_v29  ;;  %739 = vmatprep.mubr.bf16.mxu0 %v118_v29 }
  0xde   :  { %720 = vmatmul.mubr.bf16.vlgmr.msra.gmra.mxu1 %v119_v30  ;;  %740 = vmatmul.mubr.bf16.vlgmr.msra.gmra.mxu0 %v119_v30 }
  0xdf   :  { %744 = vmatpush3.bf16.msra.mxu1 %v785_v20  ;;  %759 = vmatprep.mubr.bf16.mxu1 %v118_v29 }
  0xe0   :  { %745 = vmatprep.subr.bf16.mxu1 %v786_v31 }
  0xe3   :  { %746 = vmatpush3.bf16.msra.mxu1 %v786_v31 }
  0xe4   :  { %747 = vmatprep.subr.bf16.mxu1 %v787_v32 }
  0xe7   :  { %748 = vmatpush3.bf16.msra.mxu1 %v787_v32 }
  0xe8   :  { %749 = vmatprep.subr.bf16.mxu1 %v788_v33 }
  0xeb   :  { %750 = vmatpush3.bf16.msra.mxu1 %v788_v33 }
  0xec   :  { %751 = vmatprep.subr.bf16.mxu1 %v789_v34 }
  0xef   :  { %752 = vmatpush3.bf16.msra.mxu1 %v789_v34 }
  0xf0   :  { %753 = vmatprep.subr.bf16.mxu1 %v790_v35 }
  0xf3   :  { %754 = vmatpush3.bf16.msra.mxu1 %v790_v35 }
  0xf4   :  { %755 = vmatprep.subr.bf16.mxu1 %v791_v36 }
  0xf7   :  { %756 = vmatpush3.bf16.msra.mxu1 %v791_v36 }
  0xf8   :  { %757 = vmatprep.subr.bf16.mxu1 %v792_v37 }
  0xfb   :  { %758 = vmatpush3.bf16.msra.mxu1 %v792_v37  ;;  %v592_v37 = vld [vmem:[%s892_s4 + $0x8] sm:$0xff] }
  0xfe   :  { %760 = vmatmul.mubr.bf16.vlgmr.msra.gmra.mxu1 %v119_v30 }
 0x19e   :  { %v721_v39 = vpop.f32.mrf.mxu1  ;;  %v741_v49 = vpop.f32.mrf.mxu0 }
 0x19f   :  { %v305_v53 = vrot.slane %v721_v39, 7 }
 0x1a0   :  { %v288_v41 = vpop.f32.mrf.mxu1  ;;  %v414_v58 = vpop.f32.mrf.mxu0 }
 0x1a1   :  { %v303_v57 = vrot.slane %v288_v41, 7 }
 0x1a2   :  { %v722_v43 = vpop.f32.mrf.mxu1  ;;  %v742_v3 = vpop.f32.mrf.mxu0 }
 0x1a3   :  { %v306_v54 = vrot.slane %v722_v43, 7 }
 0x1a4   :  { %v291_v46 = vpop.f32.mrf.mxu1  ;;  %v417_v17 = vpop.f32.mrf.mxu0 }
 0x1a5   :  { %v304_v50 = vrot.slane %v291_v46, 7  ;;  %v311_v62 = vsel %vm307_vm2, %v306_v54, %v303_v57  ;;  %v308_v2 = vsel %vm307_vm2, %v305_v53, %v306_v54 }
 0x1a6   :  { %v328_v5 = vsel %vm316_vm4, %v311_v62, 0.0  ;;  %v426_v12 = vadd.f32 %v742_v3, %v308_v2 }
 0x1a7   :  { %v309_v59 = vsel %vm307_vm2, %v304_v50, %v305_v53  ;;  %v310_v9 = vsel %vm307_vm2, %v303_v57, %v304_v50  ;;  %v415_v20 = vadd.f32 %v414_v58, %v328_v5 }
 0x1a8   :  { %v330_v1 = vsel %vm318_vm3, %v309_v59, 0.0  ;;  %v418_v21 = vadd.f32 %v417_v17, %v310_v9  ;;  %v620_v59 = vstv %s893_s5 }
 0x1a9   :  { %v423_v11 = vadd.f32 %v741_v49, %v330_v1 }
 0x1be   :  { %v761_v60 = vpop.f32.mrf.mxu1 }
 0x1bf   :  { %v545_v6 = vrot.slane %v761_v60, 1 }
 0x1c0   :  { %v528_v63 = vpop.f32.mrf.mxu1 }
 0x1c1   :  { %v543_v7 = vrot.slane %v528_v63, 1 }
 0x1c2   :  { %v762_v4 = vpop.f32.mrf.mxu1 }
 0x1c3   :  { %v546_v8 = vrot.slane %v762_v4, 1 }
 0x1c4   :  { %v531_v10 = vpop.f32.mrf.mxu1 }
 0x1c5   :  { %v548_v13 = vsel %vm547_vm5, %v545_v6, %v546_v8  ;;  %v551_v14 = vsel %vm547_vm5, %v546_v8, %v543_v7  ;;  %v544_v15 = vrot.slane %v531_v10, 1 }
 0x1c6   :  { %v571_v18 = vsel %vm563_vm6, %v551_v14, 0.0  ;;  %v574_v19 = vadd.f32 %v548_v13, %v423_v11 }
 0x1c7   :  { %v549_v22 = vsel %vm547_vm5, %v544_v15, %v545_v6  ;;  %v550_v23 = vsel %vm547_vm5, %v543_v7, %v544_v15  ;;  %v575_v24 = vadd.f32 %v571_v18, %v426_v12 }
 0x1c8   :  { %v569_v25 = vsel %vm561_vm7, %v549_v22, 0.0  ;;  %v585_v26 = vadd.f32 %v663_v16, %v574_v19  ;;  %v572_v27 = vadd.f32 %v550_v23, %v415_v20 }
 0x1c9   :  { %v586_v29 = vadd.f32 %v663_v16, %v575_v24  ;;  %v573_v30 = vadd.f32 %v569_v25, %v418_v21 }
 0x1ca   :  { %v589_v31 = vmax.f32 %v585_v26, 0.0  ;;  %v583_v32 = vadd.f32 %v663_v16, %v572_v27 }
 0x1cb   :  { %v584_v33 = vadd.f32 %v663_v16, %v573_v30  ;;  %v590_v36 = vmax.f32 %v586_v29, 0.0 }
 0x1cc   :  { %v595_v34 = vmul.f32 %v591_v28, %v589_v31  ;;  %v587_v35 = vmax.f32 %v583_v32, 0.0 }
 0x1cd   :  { %v588_v39 = vmax.f32 %v584_v33, 0.0  ;;  %v596_v40 = vmul.f32 %v592_v37, %v590_v36 }
 0x1ce   :  { %601 = vadd.xlane.f32.xlu1 %v595_v34  ;;  %v593_v38 = vmul.f32 %v591_v28, %v587_v35 }
 0x1cf   :  { %v594_v41 = vmul.f32 %v592_v37, %v588_v39 }
 0x1d0   :  { %597 = vadd.xlane.f32.xlu0 %v593_v38 }
 0x1d2   :  { %603 = vadd.xlane.f32.xlu1 %v596_v40 }
 0x1d4   :  { %599 = vadd.xlane.f32.xlu0 %v594_v41 }
 0x257   :  { %v602_v42 = vpop.xlane.xlu1 %601 }
 0x259   :  { %v598_v43 = vpop.xlane.xlu0 %597 }
 0x25b   :  { %v604_v44 = vpop.xlane.xlu1 %603 }
 0x25c   :  { %v612_v45 = vadd.f32 %v604_v44, %v602_v42 }
 0x25d   :  { %v600_v46 = vpop.xlane.xlu0 %599 }
 0x25e   :  { %v613_v47 = vrot.slane %v612_v45, 4  ;;  %v605_v48 = vadd.f32 %v600_v46, %v598_v43 }
 0x260   :  { %v614_v49 = vadd.f32 %v613_v47, %v612_v45  ;;  %v606_v50 = vrot.slane %v605_v48, 4 }
 0x262   :  { %v615_v51 = vrot.slane %v614_v49, 2  ;;  %v607_v52 = vadd.f32 %v606_v50, %v605_v48 }
 0x264   :  { %v616_v53 = vadd.f32 %v615_v51, %v614_v49  ;;  %v608_v54 = vrot.slane %v607_v52, 2 }
 0x266   :  { %v617_v55 = vrot.slane %v616_v53, 1  ;;  %v609_v56 = vadd.f32 %v608_v54, %v607_v52 }
 0x268   :  { %v618_v57 = vadd.f32 %v617_v55, %v616_v53  ;;  %v610_v58 = vrot.slane %v609_v56, 1 }
 0x26a   :  { %v611_v60 = vadd.f32 %v610_v58, %v609_v56  ;;  %v622_v61 = vadd.f32 %v620_v59, %v618_v57 }
 0x26c   :  { %v621_v62 = vadd.f32 %v620_v59, %v611_v60 }
 0x26e   :  { %v626_v63 = vsel %vm625_vm8, %v622_v61, %v621_v62 }
 0x26f   :  { %629 = vst.msk [vmem:[%s894_s6] sm:$0x3] %vm628_vm9, %v626_v63 }
 0x270   :  { %634 = vsyncpa [#allocation4], 1 }

</bundles_post_ra>
